<compile_context>
chip_gen: v7x
topology: tpu7x:2x2x1
jax: 0.10.0
libtpu: 0.0.40
codegen_flags: <defaults>
</compile_context>

<pallas_src>
import functools

import jax
import jax.numpy as jnp
from jax.experimental import pallas as pl
from jax.experimental.pallas import tpu as pltpu

HIDDEN = 10   # hidden width of fc1/fc2
LANE = 128


def mlp_kernel(x_ref, p_ref, o_ref):
    x = x_ref[...]                  # (2, BLK)   f32, batch on lanes
    p = p_ref[...]                  # (10, 16)   packed parameters

    w1 = p[:, 0:2]                  # (10, 2)   fc1 weight
    w2 = p[:, 2:12]                 # (10, 10)  fc2 weight
    w3c = p[:, 12:13]               # (10, 1)   fc3 weight as a column
    b1 = p[:, 13:14]                # (10, 1)
    b2 = p[:, 14:15]                # (10, 1)
    b3 = p[0:1, 15:16]              # (1, 1)

    # fc1 (K=2) on the MXU: the MXU slot has slack, VALU is the binding slot.
    h1 = jnp.dot(w1, x, preferred_element_type=jnp.float32) + b1   # (10, BLK)
    h1 = jnp.maximum(h1, 0.0)

    # fc2 (10x10) on the MXU, lane-dense (10, BLK) output.
    h2 = jnp.dot(w2, h1, preferred_element_type=jnp.float32) + b2  # (10, BLK)
    h2 = jnp.maximum(h2, 0.0)

    # fc3 (N=1): broadcast multiply + sublane (XLU) reduce instead of MXU.
    z = jnp.sum(w3c * h2, axis=0, keepdims=True) + b3              # (1, BLK)

    # Numerically-stable sigmoid: exp argument always <= 0 (EUP), and the
    # reciprocal also goes to the EUP instead of a VALU divide.
    ez = jnp.exp(-jnp.abs(z))
    r = pl.reciprocal(1.0 + ez, approx=True)                       # 1/(1+ez)
    o_ref[...] = jnp.where(z >= 0.0, r, 1.0 - r)


def pack_params(w1, b1, w2, b2, w3, b3):
    """Pack all parameters into a single (10, 16) f32 tile (one DMA)."""
    p = jnp.zeros((HIDDEN, 16), jnp.float32)
    p = p.at[:, 0:2].set(w1.astype(jnp.float32))      # fc1 weight (10, 2)
    p = p.at[:, 2:12].set(w2.astype(jnp.float32))     # fc2 weight (10, 10)
    p = p.at[:, 12].set(w3[0].astype(jnp.float32))    # fc3 weight row -> col
    p = p.at[:, 13].set(b1.astype(jnp.float32))       # fc1 bias
    p = p.at[:, 14].set(b2.astype(jnp.float32))       # fc2 bias
    p = p.at[0, 15].set(b3[0].astype(jnp.float32))    # fc3 bias
    return p


def _pick_block(batch, block_b):
    """Pick a lane-block size (multiple of 128) and the padded batch."""
    padded = pl.cdiv(batch, LANE) * LANE
    blk = max(LANE, (min(block_b, padded) // LANE) * LANE)
    # Guarantee >=2 grid steps when possible so the ('parallel',) batch grid
    # can be sharded across v7x's two TensorCores.
    if padded // blk < 2 and padded >= 2 * LANE:
        blk = max(LANE, ((padded // 2) // LANE) * LANE)
    padded = pl.cdiv(padded, blk) * blk
    return blk, padded


def _mlp_pallas(xt, p, blk):
    """xt: (2, padded) with padded a multiple of blk. Returns (1, padded)."""
    padded = xt.shape[1]
    grid = (padded // blk,)
    return pl.pallas_call(
        mlp_kernel,
        out_shape=jax.ShapeDtypeStruct((1, padded), jnp.float32),
        grid=grid,
        in_specs=[
            # Activations: batch on lanes, pipelined over the grid.
            pl.BlockSpec((2, blk), lambda i: (0, i)),
            # Packed params: constant block index -> fetched once, resident.
            pl.BlockSpec((HIDDEN, 16), lambda i: (0, 0)),
        ],
        out_specs=pl.BlockSpec((1, blk), lambda i: (0, i)),
        compiler_params=pltpu.CompilerParams(
            dimension_semantics=("parallel",),
            vmem_limit_bytes=48 * 1024 * 1024,
        ),
    )(xt, p)


@functools.partial(jax.jit, static_argnames=("block_b",))
def mlp_forward_fmajor(xt, w1, b1, w2, b2, w3, b3, *, block_b=32768):
    """Features-major entry: xt is (2, B), batch on the lane axis.

    Avoids the wrapper-side transpose/pad HBM relayout of x when the producer
    can hand over a (2, B) slab directly. Returns (1, B).
    """
    xt = xt.astype(jnp.float32)
    B = xt.shape[1]
    blk, padded = _pick_block(B, block_b)
    if padded != B:
        xt = jnp.pad(xt, ((0, 0), (0, padded - B)))
    p = pack_params(w1, b1, w2, b2, w3, b3)
    out = _mlp_pallas(xt, p, blk)
    return out[:, :B]


@functools.partial(jax.jit, static_argnames=("block_b",))
def mlp_forward(x, w1, b1, w2, b2, w3, b3, *, block_b=32768):
    """nn.Linear-style entry: x is (B, 2). Returns (B, 1).

    NOTE: the x.T relayout here is wrapper-side HBM traffic; producers that
    already have (features, batch) data should call mlp_forward_fmajor.
    """
    x = x.astype(jnp.float32)       # mirrors x.to(torch.float32)
    out_t = mlp_forward_fmajor(x.T, w1, b1, w2, b2, w3, b3, block_b=block_b)
    return out_t.T                  # (1, B) -> (B, 1) is a free reshape


def init_params(key):
    """Deterministic init mirroring nn.Linear (weights stored as (out, in))."""
    ks = jax.random.split(key, 6)
    u = lambda k, shape, fan_in: jax.random.uniform(
        k, shape, jnp.float32, -1.0 / jnp.sqrt(fan_in), 1.0 / jnp.sqrt(fan_in))
    w1 = u(ks[0], (10, 2), 2.0)
    b1 = u(ks[1], (10,), 2.0)
    w2 = u(ks[2], (10, 10), 10.0)
    b2 = u(ks[3], (10,), 10.0)
    w3 = u(ks[4], (1, 10), 10.0)
    b3 = u(ks[5], (1,), 10.0)
    return w1, b1, w2, b2, w3, b3


def reference_forward(x, w1, b1, w2, b2, w3, b3):
    x = x.astype(jnp.float32)
    h1 = jax.nn.relu(x @ w1.T + b1)
    h2 = jax.nn.relu(h1 @ w2.T + b2)
    return jax.nn.sigmoid(h2 @ w3.T + b3)


if __name__ == "__main__":
    key = jax.random.PRNGKey(0)
    k_x, k_x2, k_x3, k_p = jax.random.split(key, 4)
    params = init_params(k_p)

    # Tolerance is slightly loosened because the sigmoid uses the EUP
    # approximate reciprocal (pl.reciprocal(..., approx=True)).
    TOL = dict(atol=2e-3, rtol=2e-3)

    # Small batch (single grid step).
    B = 8
    x = jax.random.normal(k_x, (B, 2), dtype=jnp.float32)
    out = jax.block_until_ready(mlp_forward(x, *params))
    ref = reference_forward(x, *params)
    assert out.shape == (B, 1)
    assert jnp.allclose(out, ref, **TOL)

    # Ragged batch exercising padding + a multi-step 'parallel' grid.
    B2 = 777
    x2 = jax.random.normal(k_x2, (B2, 2), dtype=jnp.float32)
    out2 = jax.block_until_ready(mlp_forward(x2, *params))
    ref2 = reference_forward(x2, *params)
    assert out2.shape == (B2, 1)
    assert jnp.allclose(out2, ref2, **TOL)

    # Features-major entry point (no wrapper-side transpose/pad of x);
    # B3=512 splits into two grid steps for the two-TC ('parallel') path.
    B3 = 512
    xt3 = jax.random.normal(k_x3, (2, B3), dtype=jnp.float32)
    out3 = jax.block_until_ready(mlp_forward_fmajor(xt3, *params))
    ref3 = reference_forward(xt3.T, *params)
    assert out3.shape == (1, B3)
    assert jnp.allclose(out3.T, ref3, **TOL)

    print("KERNEL_OK")
</pallas_src>

<mosaic_0001>
module attributes {stable_mosaic.version = 11 : i64} {
  func.func @mlp_kernel(%arg0: i32, %arg1: memref<2x128xf32, #tpu.memory_space<vmem>>, %arg2: memref<10x16xf32, #tpu.memory_space<vmem>>, %arg3: memref<1x128xf32, #tpu.memory_space<vmem>>) attributes {dimension_semantics = [#tpu.dimension_semantics<parallel>], iteration_bounds = array<i64: 1>, scalar_prefetch = 0 : i64, scratch_operands = 0 : i64, tpu.core_type = #tpu.core_type<tc>, window_params = [{transform_indices = @transform_0, window_bounds = array<i64: 2, 128>}, {pipeline_mode = #tpu.pipeline_mode<synchronous>, transform_indices = @transform_1, window_bounds = array<i64: 10, 16>}, {transform_indices = @transform_2, window_bounds = array<i64: 1, 128>}]} {
    %c0 = arith.constant 0 : index
    %c0_0 = arith.constant 0 : index
    %0 = vector.load %arg1[%c0, %c0_0] : memref<2x128xf32, #tpu.memory_space<vmem>>, vector<2x128xf32>
    %c0_1 = arith.constant 0 : index
    %c0_2 = arith.constant 0 : index
    %1 = vector.load %arg2[%c0_1, %c0_2] : memref<10x16xf32, #tpu.memory_space<vmem>>, vector<10x16xf32>
    %2 = vector.extract_strided_slice %1 {offsets = [0, 0], sizes = [10, 2], strides = [1, 1]} : vector<10x16xf32> to vector<10x2xf32>
    %3 = vector.extract_strided_slice %1 {offsets = [0, 2], sizes = [10, 10], strides = [1, 1]} : vector<10x16xf32> to vector<10x10xf32>
    %4 = vector.extract_strided_slice %1 {offsets = [0, 12], sizes = [10, 1], strides = [1, 1]} : vector<10x16xf32> to vector<10x1xf32>
    %5 = vector.extract_strided_slice %1 {offsets = [0, 13], sizes = [10, 1], strides = [1, 1]} : vector<10x16xf32> to vector<10x1xf32>
    %6 = vector.extract_strided_slice %1 {offsets = [0, 14], sizes = [10, 1], strides = [1, 1]} : vector<10x16xf32> to vector<10x1xf32>
    %7 = vector.extract_strided_slice %1 {offsets = [0, 15], sizes = [1, 1], strides = [1, 1]} : vector<10x16xf32> to vector<1x1xf32>
    %cst = arith.constant dense<0.000000e+00> : vector<10x128xf32>
    %8 = tpu.matmul %2, %0, %cst {dimension_numbers = #tpu.dot_dimension_numbers<[1], [0], [0], [1], [0, 0, 1, 1], [], []>} : vector<10x2xf32>, vector<2x128xf32>, vector<10x128xf32> -> vector<10x128xf32>
    %9 = vector.broadcast %5 : vector<10x1xf32> to vector<10x128xf32>
    %10 = arith.addf %8, %9 : vector<10x128xf32>
    %cst_3 = arith.constant 0.000000e+00 : f32
    %11 = vector.broadcast %cst_3 : f32 to vector<10x128xf32>
    %12 = arith.maximumf %10, %11 : vector<10x128xf32>
    %cst_4 = arith.constant dense<0.000000e+00> : vector<10x128xf32>
    %13 = tpu.matmul %3, %12, %cst_4 {dimension_numbers = #tpu.dot_dimension_numbers<[1], [0], [0], [1], [0, 0, 1, 1], [], []>} : vector<10x10xf32>, vector<10x128xf32>, vector<10x128xf32> -> vector<10x128xf32>
    %14 = vector.broadcast %6 : vector<10x1xf32> to vector<10x128xf32>
    %15 = arith.addf %13, %14 : vector<10x128xf32>
    %cst_5 = arith.constant 0.000000e+00 : f32
    %16 = vector.broadcast %cst_5 : f32 to vector<10x128xf32>
    %17 = arith.maximumf %15, %16 : vector<10x128xf32>
    %18 = vector.broadcast %4 : vector<10x1xf32> to vector<10x128xf32>
    %19 = arith.mulf %18, %17 : vector<10x128xf32>
    %cst_6 = arith.constant dense<0.000000e+00> : vector<128xf32>
    %20 = vector.multi_reduction <add>, %19, %cst_6 [0] : vector<10x128xf32> to vector<128xf32>
    %21 = vector.shape_cast %20 : vector<128xf32> to vector<1x128xf32>
    %22 = vector.broadcast %7 : vector<1x1xf32> to vector<1x128xf32>
    %23 = arith.addf %21, %22 : vector<1x128xf32>
    %24 = math.absf %23 : vector<1x128xf32>
    %cst_7 = arith.constant 0.000000e+00 : f32
    %25 = vector.broadcast %cst_7 : f32 to vector<1x128xf32>
    %26 = arith.subf %25, %24 : vector<1x128xf32>
    %27 = math.exp %26 : vector<1x128xf32>
    %cst_8 = arith.constant 1.000000e+00 : f32
    %28 = vector.broadcast %cst_8 : f32 to vector<1x128xf32>
    %29 = arith.addf %28, %27 : vector<1x128xf32>
    %30 = tpu.reciprocal %29 {approx = true} : vector<1x128xf32> -> vector<1x128xf32>
    %cst_9 = arith.constant 0.000000e+00 : f32
    %31 = vector.broadcast %cst_9 : f32 to vector<1x128xf32>
    %32 = arith.cmpf oge, %23, %31 : vector<1x128xf32>
    %cst_10 = arith.constant 1.000000e+00 : f32
    %33 = vector.broadcast %cst_10 : f32 to vector<1x128xf32>
    %34 = arith.subf %33, %30 : vector<1x128xf32>
    %35 = arith.select %32, %30, %34 : vector<1x128xi1>, vector<1x128xf32>
    %c0_11 = arith.constant 0 : index
    %c0_12 = arith.constant 0 : index
    %36 = vector.load %arg3[%c0_11, %c0_12] : memref<1x128xf32, #tpu.memory_space<vmem>>, vector<1x128xf32>
    tpu.vector_store %arg3[%c0_11, %c0_12], %35 {strides = array<i32>} : memref<1x128xf32, #tpu.memory_space<vmem>>, vector<1x128xf32>,
    return
  }
  func.func @transform_0(%arg0: i32) -> (i32, i32) {
    %c0_i32 = arith.constant 0 : i32
    %c0_i32_0 = arith.constant 0 : i32
    return %c0_i32, %arg0 : i32, i32
  }
  func.func @transform_1(%arg0: i32) -> (i32, i32) {
    %c0_i32 = arith.constant 0 : i32
    %c0_i32_0 = arith.constant 0 : i32
    %c0_i32_1 = arith.constant 0 : i32
    return %c0_i32, %c0_i32_0 : i32, i32
  }
  func.func @transform_2(%arg0: i32) -> (i32, i32) {
    %c0_i32 = arith.constant 0 : i32
    %c0_i32_0 = arith.constant 0 : i32
    return %c0_i32, %arg0 : i32, i32
  }
}

</mosaic_0001>

<bundles_post_ra>
// kernel: mlp_forward_fmajor.1
= control target key start
LH: loop header
LB: loop body
LE: loop exit
PB: predicated region body
PF: predicated region fallthrough
CT: control target
= control target key end

     0   :  { %vm30_vm0 = vcmask 1041408   ;;  %vm25_vm1 = vcmask 15360   ;;  %s377_s0 = inlined_call_operand.vmem [shape: f32[2,128], index: 0, kind: input, shape index: {}]   ;;  %s378_s1 = inlined_call_operand.vmem [shape: f32[10,16], index: 1, kind: input, shape index: {}]   ;;  %s379_s2 = inlined_call_operand.hbm [shape: f32[1,128], index: 2, kind: output, shape index: {}]  }
   0x1   :  { %v12_v0 = vld [vmem:[%s377_s0] sm:$0x3]  ;;  %v14_v2 = vld [vmem:[%s378_s1 + $0x8] sm:$0x3] }
   0x2   :  { %v13_v1 = vld [vmem:[%s378_s1] sm:$0xff]  ;;  %268 = vmatprep.subr.msk.mxu0 %vm30_vm0, %v12_v0 }
   0x3   :  { %270 = vmatprep.mubr.msk.f32.mxu0 %vm25_vm1, %v13_v1 }
   0x4   :  { %7 = vsyncpa [#allocation3], 0  ;;  %269 = vmatpush3.msk.msra.mxu0 %vm30_vm0, %v12_v0  ;;  %v328_v3 = vmov 13   ;;  %s329_s0 = smov 126   ;;  %v330_v4 = vmov 14   ;;  %v331_v5 = vmov 12  }
   0x5   :  { %293 = vset.pattern.permute.xlu0 %v328_v3  ;;  %271 = vmatmul.mubr.msk.f32.vlgmr.msra.gmra.mrb[0].mxu0 %vm25_vm1, %v14_v2  ;;  %v332_v6 = vmov 15   ;;  %vm123_vm2 = vcmask 80896   ;;  %vm333_vm3 = vmmov 1   ;;  %s334_s1 = smov [#allocation2]  }
   0x6   :  { %17 = vperm.xlu0 %293, %v13_v1   ;;  %119 = vrot.lane.b32.xlu1 %v13_v1, %s329_s0  ;;  %vm281_vm4 = vmpackc.low %vm30_vm0, %vm333_vm3  ;;  %s247_s15 = sshll.u32 %s334_s1, 4  ;;  %s248_s15 = int_to_ptr.vmem [resolvable:$true] %s247_s15 }
   0x7   :  { %295 = vset.pattern.permute.xlu1 %v330_v4  ;;  %s304_s16 = scalar_lea.vmem %s248_s15, 16  ;;  %s308_s17 = scalar_lea.vmem %s248_s15, 32 }
   0x8   :  { %p305_p0 = scmp.ne.s32.totalorder %s248_s15, %s304_s16  ;;  %p309_p1 = scmp.lt.s32.totalorder %s248_s15, %s248_s15 }
   0x9   :  { %p310_p2 = scmp.lt.s32.totalorder %s308_s17, %s304_s16 }
   0xa   :  { %22 = vperm.xlu0 %293, %v14_v2   ;;  %121 = vrot.lane.b32.xlu1 %v14_v2, %s329_s0 }
   0xb   :  { %p311_p3 = por %p310_p2, %p309_p1 }
   0xd   :  { %p312_p4 = pnand %p311_p3, %p305_p0 }
   0xe   :  { %294 = vset.pattern.permute.xlu0 %v330_v4  ;;  %112 = vperm.xlu1 %295, %v13_v1  }
   0xf   :  { %116 = vperm.xlu0 %294, %v14_v2  }
  0x12   :  { %296 = vset.pattern.permute.xlu1 %v331_v5 }
  0x13   :  { %297 = vset.pattern.permute.xlu0 %v331_v5  ;;  %213 = vperm.xlu1 %296, %v14_v2  }
  0x14   :  { %209 = vperm.xlu0 %297, %v13_v1  }
  0x17   :  { %298 = vset.pattern.permute.xlu1 %v332_v6 }
  0x18   :  { %299 = vset.pattern.permute.xlu0 %v332_v6  ;;  %227 = vperm.xlu1 %298, %v13_v1  }
  0x78   :  { %v120_v7 = vpop.permute.xlu1 %119 }
  0x79   :  { %277 = vmatprep.mubr.msk.f32.mxu1 %vm123_vm2, %v120_v7 }
  0x7c   :  { %v122_v17 = vpop.permute.xlu1 %121 }
  0x85   :  { %v18_v8 = vpop.permute.xlu0 %17 }
  0x89   :  { %v23_v9 = vpop.permute.xlu0 %22 }
  0x8d   :  { %v113_v18 = vpop.permute.xlu1 %112 }
  0x8e   :  { %v117_v19 = vpop.permute.xlu0 %116 }
  0x92   :  { %v214_v24 = vpop.permute.xlu1 %213 }
  0x93   :  { %v210_v26 = vpop.permute.xlu0 %209 }
  0x97   :  { %v228_v37 = vpop.permute.xlu1 %227 }
  0xd8   :  { %v272_v10 = vpop.f32.mrb[0].mxu0 }
  0xd9   :  { %v106_v11 = vadd.f32 %v272_v10, %v23_v9  ;;  %v100_v12 = vpop.f32.mrb[1].mxu0 }
  0xda   :  { %v101_v13 = vadd.f32 %v100_v12, %v18_v8 }
  0xdb   :  { %v110_v14 = vmax.f32 %v106_v11, 0.0 }
  0xdc   :  { %v109_v15 = vmax.f32 %v101_v13, 0.0 }
  0xde   :  { %v280_v16 = vpack.c.bf16 %v110_v14, %v109_v15 }
  0xe0   :  { %282 = vmatprep.subr.msk.bf16.mxu1 %vm281_vm4, %v280_v16 }
  0xe1   :  { %285 = vmatpush3.bf16.msk.msra.mxu1 %vm281_vm4, %v280_v16 }
  0xe4   :  { %278 = vmatmul.mubr.msk.f32.vlgmr.msra.gmra.mrb[0].mxu1 %vm123_vm2, %v122_v17 }
 0x1b7   :  { %v279_v20 = vpop.f32.mrb[0].mxu1 }
 0x1b8   :  { %v203_v21 = vadd.f32 %v279_v20, %v117_v19  ;;  %v197_v22 = vpop.f32.mrb[1].mxu1 }
 0x1b9   :  { %v198_v23 = vadd.f32 %v197_v22, %v113_v18 }
 0x1ba   :  { %v207_v25 = vmax.f32 %v203_v21, 0.0 }
 0x1bb   :  { %v206_v27 = vmax.f32 %v198_v23, 0.0 }
 0x1bc   :  { %v217_v28 = vmul.f32 %v214_v24, %v207_v25 }
 0x1bd   :  { %v216_v29 = vmul.f32 %v210_v26, %v206_v27 }
 0x1be   :  { %v218_v30 = vsel %vm30_vm0, %v217_v28, 0.0 }
 0x1bf   :  { %v219_v31 = vadd.f32 %v218_v30, %v216_v29 }
 0x1c1   :  { %v220_v32 = vrot.slane %v219_v31, 4 }
 0x1c3   :  { %v221_v33 = vadd.f32 %v220_v32, %v219_v31 }
 0x1c5   :  { %v222_v34 = vrot.slane %v221_v33, 2 }
 0x1c7   :  { %v223_v35 = vadd.f32 %v222_v34, %v221_v33 }
 0x1c9   :  { %v224_v36 = vrot.slane %v223_v35, 1 }
 0x1cb   :  { %v225_v38 = vadd.f32 %v224_v36, %v223_v35 }
 0x1cd   :  { %v230_v39 = vadd.f32 %v228_v37, %v225_v38 }
 0x1cf   :  { %v231_v40 = vand.u32 2147483647, %v230_v39  ;;  %vm237_vm5 = vcmp.ge.f32.partialorder %v230_v39, 0.0 }
 0x1d1   :  { %v232_v41 = vsub.f32 0.0, %v231_v40 }
 0x1d3   :  { %v233_v42 = vmul.f32 1.442695, %v232_v41 }
 0x1d5   :  { %300 = vpow2.f32 %v233_v42 }
 0x1df   :  { %v301_v43 = vpop.eup %300 }
 0x1e0   :  { %v235_v44 = vadd.f32 1.0, %v301_v43 }
 0x1e2   :  { %302 = vrcp.f32 %v235_v44 }
 0x1ec   :  { %v303_v45 = vpop.eup %302 }
 0x1ed   :  { %v238_v46 = vsub.f32 1.0, %v303_v45 }
 0x1ef   :  { %v239_v47 = vsel %vm237_vm5, %v303_v45, %v238_v46 }
 0x1f0   :  { %240 = vst [vmem:[#allocation2] sm:$0x1] %v239_v47 }
 0x1f1   :  { %315 = shalt.err (!%p312_p4)
}
 0x1f2   :  { %s316_s20 = scalar_lea.hbm %s379_s2, 16 }
 0x1f3   :  { %p317_p5 = scmp.ne.s32.totalorder %s379_s2, %s316_s20  ;;  %p320_p6 = scmp.lt.u32.totalorder %s316_s20, %s379_s2 }
 0x1f5   :  { %p322_p7 = pnand %p320_p6, %p317_p5 }
 0x1f7   :  { %325 = shalt.err (!%p322_p7)
}
 0x1f8   :  { %250 = dma.vmem_to_hbm [thread:$0]  %s248_s15, 16, %s379_s2, [#allocation3]  }
 0x1f9   :  { %326 = dma.done.wait [#allocation3], 16  }
 0x1fa   :  { %327 = vsyncadd [#allocation3], 4294967280 }
 0x1fb   :  { %254 = vsyncpa [#allocation3], 1 }

</bundles_post_ra>
